<compile_context>
chip_gen: v7x
topology: tpu7x:2x2x1
jax: 0.10.0
libtpu: 0.0.40
codegen_flags: <defaults>
</compile_context>

<pallas_src>
import functools

import jax
import jax.numpy as jnp
from jax.experimental import pallas as pl
from jax.experimental.pallas import tpu as pltpu


def _game_dist_kernel(params_ref, alen_ref, pc_ref, out_ref):
    """out[u, j] = exp(pc[j]*log_ratio[u] + bias[u]) if j < alen[u] else 0.

    params_ref: (2, U_BLK, 1) f32 VMEM, rows = [log_ratio, bias]
    alen_ref:   (U_BLK, 1)    i32 VMEM
    pc_ref:     (1, L_BLK)    f32 VMEM, pc[j] = popcount(global j)
    out_ref:    (U_BLK, L_BLK) VMEM
    """
    log_ratio = params_ref[0]          # (U_BLK, 1) — broadcasts along lanes
    bias = params_ref[1]               # (U_BLK, 1)
    alen = alen_ref[...]               # (U_BLK, 1) int32
    lf = pc_ref[...]                   # (1, L_BLK) — broadcasts along sublanes

    # gam**l * (1-gam)**(hlen-l) == exp(l*(log_g - log_1mg) + hlen*log_1mg)
    val = jnp.exp(lf * log_ratio + bias)                     # (U_BLK, L_BLK)

    # Mask j >= action_len[u] (and padded user rows, which carry alen == 0).
    # Compare in int32: global column index of this lane block.
    l_blk = out_ref.shape[1]
    j = (jax.lax.broadcasted_iota(jnp.int32, out_ref.shape, 1)
         + pl.program_id(1) * l_blk)
    out_ref[...] = jnp.where(j < alen, val, 0.0).astype(out_ref.dtype)


def _popcount_table(n):
    """(1, n) f32 table of popcounts, built device-side (SWAR, O(1) fused ops)."""
    x = jnp.arange(n, dtype=jnp.uint32)
    x = x - ((x >> 1) & jnp.uint32(0x55555555))
    x = (x & jnp.uint32(0x33333333)) + ((x >> 2) & jnp.uint32(0x33333333))
    x = (x + (x >> 4)) & jnp.uint32(0x0F0F0F0F)
    x = (x * jnp.uint32(0x01010101)) >> 24
    return x.astype(jnp.float32).reshape(1, n)


def _round_up(x, m):
    return -(-x // m) * m


@functools.partial(jax.jit, static_argnames=("max_action", "out_dtype"))
def game_distribution_forward_batched(gamma, action_len, history_len, users, *,
                                      max_action, out_dtype=jnp.float32):
    """Batched GameDistribution.forward (distribution_type == 1) for a set of users.

    gamma:       (n_users,) f32 parameter
    action_len:  (n_users,) i32
    history_len: (n_users,) i32
    users:       (U,) i32 user indices
    returns:     (U, max_action) out_dtype
    """
    users = jnp.asarray(users, jnp.int32)
    u_count = users.shape[0]

    # --- padding / tiling (lane-dense output, bounded VMEM blocks) -------------
    u_pad8 = _round_up(u_count, 8)
    U_BLK = min(u_pad8, 512)                       # v7x-safe user block
    u_pad = _round_up(u_pad8, U_BLK)

    ma_pad128 = _round_up(max_action, 128)
    L_BLK = min(ma_pad128, 2048)                   # 512x2048 f32 block = 4 MiB
    ma_pad = _round_up(ma_pad128, L_BLK)

    grid = (u_pad // U_BLK, ma_pad // L_BLK)

    # --- glue: gather per-user scalars, hoist transcendentals & factoring ------
    g = gamma[users].astype(jnp.float32)
    log_g = jax.nn.log_sigmoid(g)                  # log(sigmoid(g)), never -inf
    log_1mg = jax.nn.log_sigmoid(-g)               # log(1-sigmoid(g)), never -inf
    hlen = history_len[users].astype(jnp.float32)

    log_ratio = log_g - log_1mg                    # O(U) wrapper work
    bias = hlen * log_1mg

    params = jnp.stack([log_ratio, bias], axis=0)[:, :, None]        # (2, U, 1)
    # Zero-pad extra user rows (padded alen == 0 ⇒ fully masked to 0 in-kernel).
    params = jnp.pad(params, ((0, 0), (0, u_pad - u_count), (0, 0)))
    alen = jnp.pad(action_len[users].astype(jnp.int32),
                   ((0, u_pad - u_count),)).reshape(u_pad, 1)

    # Static-shape popcount table over the padded lane extent.
    pc = _popcount_table(ma_pad)

    out_bytes = u_pad * ma_pad * jnp.dtype(out_dtype).itemsize
    in_bytes = (2 * u_pad + u_pad + ma_pad) * 4
    cost = pl.CostEstimate(flops=3 * u_pad * ma_pad,
                           transcendentals=u_pad * ma_pad,
                           bytes_accessed=out_bytes + in_bytes)

    out = pl.pallas_call(
        _game_dist_kernel,
        out_shape=jax.ShapeDtypeStruct((u_pad, ma_pad), out_dtype),
        grid_spec=pltpu.PrefetchScalarGridSpec(
            num_scalar_prefetch=0,
            grid=grid,
            in_specs=[
                pl.BlockSpec((2, U_BLK, 1), lambda i, j: (0, i, 0)),   # params
                pl.BlockSpec((U_BLK, 1), lambda i, j: (i, 0)),         # alen
                pl.BlockSpec((1, L_BLK), lambda i, j: (0, j)),         # popcount
            ],
            out_specs=pl.BlockSpec((U_BLK, L_BLK), lambda i, j: (i, j)),
        ),
        compiler_params=pltpu.CompilerParams(
            dimension_semantics=("parallel", "arbitrary"),
            vmem_limit_bytes=64 * 1024 * 1024),
        cost_estimate=cost,
    )(params, alen, pc)

    return out[:u_count, :max_action]


def game_distribution_forward(gamma, action_len, history_len, u, *, max_action):
    """Single-user forward(u), matching the PyTorch module's signature."""
    users = jnp.reshape(jnp.asarray(u, jnp.int32), (1,))
    return game_distribution_forward_batched(
        gamma, action_len, history_len, users, max_action=max_action)[0]


def reference_forward(gamma, action_len, history_len, u, max_action):
    """Pure-numpy reference matching the PyTorch loop."""
    import numpy as np
    g = 1.0 / (1.0 + np.exp(-float(gamma[u])))
    temp = np.zeros((max_action,), dtype=np.float32)
    for j in range(int(action_len[u])):
        l = bin(j).count("1")
        temp[j] = (g ** l) * ((1.0 - g) ** (int(history_len[u]) - l))
    return temp


# TODO(synk): init_distribution / get_action_by_distribution / softnorm and the
# distribution_type == 2 / else forward branches are host-side python loops over
# ragged per-user lengths; they are not part of this kernel.

if __name__ == "__main__":
    import numpy as np

    key = jax.random.PRNGKey(0)

    # Small synthetic module configuration (distribution_type = 1).
    n_users = 8
    history_len = jnp.array([3, 4, 5, 6, 7, 2, 5, 4], dtype=jnp.int32)   # bits per user
    action_len = (1 << history_len).astype(jnp.int32)                    # 2**history_len
    max_action = int(jnp.max(action_len))                                # = 128 (lane-aligned)

    # Deterministic parameter init (torch.rand(n_users) analogue).
    gamma = jax.random.uniform(key, (n_users,), dtype=jnp.float32)

    gamma_np = np.asarray(gamma)
    alen_np = np.asarray(action_len)
    hlen_np = np.asarray(history_len)

    # 1) Single-user forward: user with the longest history (fills the whole row).
    u = 4
    out = jax.block_until_ready(
        game_distribution_forward(gamma, action_len, history_len, u,
                                  max_action=max_action))
    ref = reference_forward(gamma_np, alen_np, hlen_np, u, max_action)
    np.testing.assert_allclose(np.asarray(out), ref, rtol=1e-5, atol=1e-6)

    # 2) Single-user forward with action_len < max_action (masking path).
    u2 = 1
    out2 = jax.block_until_ready(
        game_distribution_forward(gamma, action_len, history_len, u2,
                                  max_action=max_action))
    ref2 = reference_forward(gamma_np, alen_np, hlen_np, u2, max_action)
    np.testing.assert_allclose(np.asarray(out2), ref2, rtol=1e-5, atol=1e-6)

    # 3) Batched forward over all users in one kernel call (sublane-dense path).
    users = jnp.arange(n_users, dtype=jnp.int32)
    outs = jax.block_until_ready(
        game_distribution_forward_batched(gamma, action_len, history_len, users,
                                          max_action=max_action))
    for i in range(n_users):
        ref_i = reference_forward(gamma_np, alen_np, hlen_np, i, max_action)
        np.testing.assert_allclose(np.asarray(outs[i]), ref_i, rtol=1e-5, atol=1e-6)

    # 4) Non-128-multiple max_action exercises the lane-padding + slice path.
    ma_odd = 100
    out3 = jax.block_until_ready(
        game_distribution_forward_batched(gamma, action_len, history_len,
                                          jnp.array([5, 0], dtype=jnp.int32),
                                          max_action=ma_odd))
    for row, uu in enumerate([5, 0]):
        ref_u = reference_forward(gamma_np, alen_np, hlen_np, uu, ma_odd)
        np.testing.assert_allclose(np.asarray(out3[row]), ref_u,
                                   rtol=1e-5, atol=1e-6)

    print("KERNEL_OK")
</pallas_src>

<mosaic_0001>
module attributes {stable_mosaic.version = 11 : i64} {
  func.func @_game_dist_kernel(%arg0: i32, %arg1: i32, %arg2: memref<2x8x1xf32, #tpu.memory_space<vmem>>, %arg3: memref<8x1xi32, #tpu.memory_space<vmem>>, %arg4: memref<1x128xf32, #tpu.memory_space<vmem>>, %arg5: memref<8x128xf32, #tpu.memory_space<vmem>>) attributes {dimension_semantics = [#tpu.dimension_semantics<parallel>, #tpu.dimension_semantics<arbitrary>], iteration_bounds = array<i64: 1, 1>, scalar_prefetch = 0 : i64, scratch_operands = 0 : i64, tpu.core_type = #tpu.core_type<tc>, window_params = [{transform_indices = @transform_0, window_bounds = array<i64: 2, 8, 1>}, {transform_indices = @transform_1, window_bounds = array<i64: 8, 1>}, {transform_indices = @transform_2, window_bounds = array<i64: 1, 128>}, {transform_indices = @transform_3, window_bounds = array<i64: 8, 128>}]} {
    %c0 = arith.constant 0 : index
    %c0_0 = arith.constant 0 : index
    %c0_1 = arith.constant 0 : index
    %0 = vector.load %arg2[%c0, %c0_0, %c0_1] : memref<2x8x1xf32, #tpu.memory_space<vmem>>, vector<1x8x1xf32>
    %1 = vector.shape_cast %0 : vector<1x8x1xf32> to vector<8x1xf32>
    %c1 = arith.constant 1 : index
    %c0_2 = arith.constant 0 : index
    %c0_3 = arith.constant 0 : index
    %2 = vector.load %arg2[%c1, %c0_2, %c0_3] : memref<2x8x1xf32, #tpu.memory_space<vmem>>, vector<1x8x1xf32>
    %3 = vector.shape_cast %2 : vector<1x8x1xf32> to vector<8x1xf32>
    %c0_4 = arith.constant 0 : index
    %c0_5 = arith.constant 0 : index
    %4 = vector.load %arg3[%c0_4, %c0_5] : memref<8x1xi32, #tpu.memory_space<vmem>>, vector<8x1xi32>
    %c0_6 = arith.constant 0 : index
    %c0_7 = arith.constant 0 : index
    %5 = vector.load %arg4[%c0_6, %c0_7] : memref<1x128xf32, #tpu.memory_space<vmem>>, vector<1x128xf32>
    %6 = vector.broadcast %5 : vector<1x128xf32> to vector<8x128xf32>
    %7 = vector.broadcast %1 : vector<8x1xf32> to vector<8x128xf32>
    %8 = arith.mulf %6, %7 : vector<8x128xf32>
    %9 = vector.broadcast %3 : vector<8x1xf32> to vector<8x128xf32>
    %10 = arith.addf %8, %9 : vector<8x128xf32>
    %11 = math.exp %10 : vector<8x128xf32>
    %12 = tpu.iota {dimensions = array<i32: 1>} : vector<8x128xi32>
    %c128_i32 = arith.constant 128 : i32
    %13 = arith.muli %arg1, %c128_i32 : i32
    %14 = vector.broadcast %13 : i32 to vector<8x128xi32>
    %15 = arith.addi %12, %14 : vector<8x128xi32>
    %16 = vector.broadcast %4 : vector<8x1xi32> to vector<8x128xi32>
    %17 = arith.cmpi slt, %15, %16 : vector<8x128xi32>
    %cst = arith.constant 0.000000e+00 : f32
    %18 = vector.broadcast %cst : f32 to vector<8x128xf32>
    %19 = arith.select %17, %11, %18 : vector<8x128xi1>, vector<8x128xf32>
    %c0_8 = arith.constant 0 : index
    %c0_9 = arith.constant 0 : index
    %20 = vector.load %arg5[%c0_8, %c0_9] : memref<8x128xf32, #tpu.memory_space<vmem>>, vector<8x128xf32>
    tpu.vector_store %arg5[%c0_8, %c0_9], %19 {strides = array<i32>} : memref<8x128xf32, #tpu.memory_space<vmem>>, vector<8x128xf32>,
    return
  }
  func.func @transform_0(%arg0: i32, %arg1: i32) -> (i32, i32, i32) {
    %c0_i32 = arith.constant 0 : i32
    %c0_i32_0 = arith.constant 0 : i32
    %c0_i32_1 = arith.constant 0 : i32
    return %c0_i32, %arg0, %c0_i32_0 : i32, i32, i32
  }
  func.func @transform_1(%arg0: i32, %arg1: i32) -> (i32, i32) {
    %c0_i32 = arith.constant 0 : i32
    %c0_i32_0 = arith.constant 0 : i32
    return %arg0, %c0_i32 : i32, i32
  }
  func.func @transform_2(%arg0: i32, %arg1: i32) -> (i32, i32) {
    %c0_i32 = arith.constant 0 : i32
    %c0_i32_0 = arith.constant 0 : i32
    return %c0_i32, %arg1 : i32, i32
  }
  func.func @transform_3(%arg0: i32, %arg1: i32) -> (i32, i32) {
    %c0_i32 = arith.constant 0 : i32
    return %arg0, %arg1 : i32, i32
  }
}

</mosaic_0001>

<bundles_post_ra>
// kernel: game_distribution_forward_batched.1
= control target key start
LH: loop header
LB: loop body
LE: loop exit
PB: predicated region body
PF: predicated region fallthrough
CT: control target
= control target key end

     0   :  { %8 = vsyncpa [#allocation3], 0  ;;  %s292_s0 = inlined_call_operand.hbm [shape: f32[2,8,1], index: 0, kind: input, shape index: {}]   ;;  %s293_s1 = inlined_call_operand.hbm [shape: s32[8,1], index: 1, kind: input, shape index: {}]   ;;  %s294_s2 = inlined_call_operand.hbm [shape: f32[1,128], index: 2, kind: input, shape index: {}]   ;;  %s295_s3 = inlined_call_operand.hbm [shape: f32[8,128], index: 3, kind: output, shape index: {}]  }
   0x1   :  { %9 = vsyncpa [#allocation6], 0 }
   0x2   :  { %10 = vsyncpa [#allocation4], 0  ;;  %s210_s12 = smov [#allocation5]   ;;  %s211_s14 = smov [#allocation2]  }
   0x3   :  { %s29_s13 = sshll.u32 %s210_s12, 4  ;;  %s16_s15 = sshll.u32 %s211_s14, 4  ;;  %s30_s13 = int_to_ptr.vmem [resolvable:$true] %s29_s13  ;;  %s237_s15 = int_to_ptr.vmem [resolvable:$true] %s16_s15 }
   0x4   :  { %s116_s18 = scalar_lea.hbm %s293_s1, 128 }
   0x5   :  { %p117_p0 = scmp.ne.s32.totalorder %s293_s1, %s116_s18  ;;  %p120_p1 = scmp.lt.u32.totalorder %s116_s18, %s293_s1 }
   0x7   :  { %p122_p2 = pnand %p120_p1, %p117_p0 }
   0x9   :  { %125 = shalt.err (!%p122_p2)
}
   0xa   :  { %s126_s23 = scalar_lea.vmem %s30_s13, 128  ;;  %p131_p4 = scmp.lt.s32.totalorder %s30_s13, %s30_s13 }
   0xb   :  { %p127_p3 = scmp.ne.s32.totalorder %s30_s13, %s126_s23  ;;  %p132_p5 = scmp.lt.s32.totalorder %s126_s23, %s126_s23 }
   0xd   :  { %p133_p6 = por %p132_p5, %p131_p4 }
   0xf   :  { %p134_p7 = pnand %p133_p6, %p127_p3 }
  0x11   :  { %137 = shalt.err (!%p134_p7)
}
  0x12   :  { %32 = dma.hbm_to_vmem [thread:$0]  %s293_s1, 128, %s30_s13, [#allocation6]  }
  0x13   :  { %s138_s28 = scalar_lea.hbm %s292_s0, 256 }
  0x14   :  { %p139_p8 = scmp.ne.s32.totalorder %s292_s0, %s138_s28  ;;  %p142_p9 = scmp.lt.u32.totalorder %s138_s28, %s292_s0 }
  0x16   :  { %p144_p10 = pnand %p142_p9, %p139_p8 }
  0x18   :  { %147 = shalt.err (!%p144_p10)
}
  0x19   :  { %s148_s6 = scalar_lea.vmem %s237_s15, 256  ;;  %p153_p12 = scmp.lt.s32.totalorder %s237_s15, %s237_s15 }
  0x1a   :  { %p149_p11 = scmp.ne.s32.totalorder %s237_s15, %s148_s6  ;;  %p154_p13 = scmp.lt.s32.totalorder %s148_s6, %s148_s6 }
  0x1c   :  { %p155_p0 = por %p154_p13, %p153_p12 }
  0x1e   :  { %p156_p1 = pnand %p155_p0, %p149_p11 }
  0x20   :  { %159 = shalt.err (!%p156_p1)
}
  0x21   :  { %s212_s1 = smov 128   ;;  %s213_s7 = smov 8  }
  0x22   :  { %22 = dma.hbm_to_vmem [thread:$0]  %s292_s0, 256, %s237_s15, [#allocation3], %s212_s1, %s212_s1, %s213_s7  }
  0x23   :  { %s214_s10 = smov [#allocation7]   ;;  %s160_s14 = scalar_lea.hbm %s294_s2, 16 }
  0x24   :  { %s39_s11 = sshll.u32 %s214_s10, 4  ;;  %p161_p2 = scmp.ne.s32.totalorder %s294_s2, %s160_s14  ;;  %s40_s11 = int_to_ptr.vmem [resolvable:$true] %s39_s11 }
  0x25   :  { %p164_p3 = scmp.lt.u32.totalorder %s160_s14, %s294_s2 }
  0x27   :  { %p166_p4 = pnand %p164_p3, %p161_p2 }
  0x29   :  { %169 = shalt.err (!%p166_p4)
}
  0x2a   :  { %s170_s20 = scalar_lea.vmem %s40_s11, 16  ;;  %s174_s0 = scalar_lea.vmem %s40_s11, 32 }
  0x2b   :  { %p171_p5 = scmp.ne.s32.totalorder %s40_s11, %s170_s20  ;;  %p175_p6 = scmp.lt.s32.totalorder %s40_s11, %s40_s11 }
  0x2c   :  { %p176_p7 = scmp.lt.s32.totalorder %s174_s0, %s170_s20 }
  0x2e   :  { %p177_p8 = por %p176_p7, %p175_p6 }
  0x30   :  { %p178_p9 = pnand %p177_p8, %p171_p5 }
  0x32   :  { %181 = shalt.err (!%p178_p9)
}
  0x33   :  { %42 = dma.hbm_to_vmem [thread:$0]  %s294_s2, 16, %s40_s11, [#allocation6]  }
  0x34   :  { %204 = dma.done.wait [#allocation3], 256  }
  0x35   :  { %205 = vsyncadd [#allocation3], 4294967040 }
  0x36   :  { %206 = dma.done.wait [#allocation6], 144  }
  0x37   :  { %207 = vsyncadd [#allocation6], 4294967152  ;;  %v215_v0 = vmov 0   ;;  %v52_v1 = vld [vmem:[#allocation2] sm:$0xff]  ;;  %v55_v2 = vld [vmem:[#allocation5] sm:$0xff]  ;;  %v77_v10 = vlaneseq  ;;  %s216_s2 = smov [#allocation8]  }
  0x38   :  { %112 = vset.pattern.permute.xlu0 %v215_v0  ;;  %113 = vset.pattern.permute.xlu1 %v215_v0  ;;  %v54_v3 = vld [vmem:[#allocation2 + $0x8] sm:$0xff]  ;;  %v104_v4 = vld [vmem:[#allocation7] ss:$0 sm:$0xff]  ;;  %s94_s22 = sshll.u32 %s216_s2, 4  ;;  %s95_s22 = int_to_ptr.vmem [resolvable:$true] %s94_s22 }
  0x39   :  { %65 = vperm.xlu0 %112, %v52_v1   ;;  %83 = vperm.xlu1 %113, %v55_v2   ;;  %v78_v11 = vand.u32 127, %v77_v10  ;;  %s182_s23 = scalar_lea.vmem %s95_s22, 128  ;;  %p187_p11 = scmp.lt.s32.totalorder %s95_s22, %s95_s22 }
  0x3a   :  { %p183_p10 = scmp.ne.s32.totalorder %s95_s22, %s182_s23  ;;  %p188_p12 = scmp.lt.s32.totalorder %s182_s23, %s182_s23 }
  0x3c   :  { %p189_p13 = por %p188_p12, %p187_p11 }
  0x3d   :  { %71 = vperm.xlu0 %112, %v54_v3  }
  0x3e   :  { %p190_p0 = pnand %p189_p13, %p183_p10 }
  0xb8   :  { %v66_v5 = vpop.permute.xlu0 %65  ;;  %v84_v12 = vpop.permute.xlu1 %83 }
  0xb9   :  { %v68_v6 = vmul.f32 %v104_v4, %v66_v5  ;;  %vm85_vm0 = vcmp.lt.s32.totalorder %v78_v11, %v84_v12 }
  0xbc   :  { %v72_v7 = vpop.permute.xlu0 %71 }
  0xbd   :  { %v74_v8 = vadd.f32 %v72_v7, %v68_v6 }
  0xbf   :  { %v75_v9 = vmul.f32 1.442695, %v74_v8 }
  0xc1   :  { %114 = vpow2.f32 %v75_v9 }
  0xcb   :  { %v115_v13 = vpop.eup %114 }
  0xcc   :  { %v86_v14 = vsel %vm85_vm0, %v115_v13, 0.0 }
  0xcd   :  { %87 = vst [vmem:[#allocation8] sm:$0xff] %v86_v14 }
  0xce   :  { %193 = shalt.err (!%p190_p0)
}
  0xcf   :  { %s194_s26 = scalar_lea.hbm %s295_s3, 128 }
  0xd0   :  { %p195_p1 = scmp.ne.s32.totalorder %s295_s3, %s194_s26  ;;  %p198_p2 = scmp.lt.u32.totalorder %s194_s26, %s295_s3 }
  0xd2   :  { %p200_p3 = pnand %p198_p2, %p195_p1 }
  0xd4   :  { %203 = shalt.err (!%p200_p3)
}
  0xd5   :  { %97 = dma.vmem_to_hbm [thread:$0]  %s95_s22, 128, %s295_s3, [#allocation4]  }
  0xd6   :  { %208 = dma.done.wait [#allocation4], 128  }
  0xd7   :  { %209 = vsyncadd [#allocation4], 4294967168 }
  0xd8   :  { %101 = vsyncpa [#allocation3], 1 }
  0xd9   :  { %102 = vsyncpa [#allocation6], 1 }
  0xda   :  { %103 = vsyncpa [#allocation4], 1 }

</bundles_post_ra>
